<compile_context>
chip_gen: v7x
topology: tpu7x:2x2x1
jax: 0.10.0
libtpu: 0.0.40
codegen_flags: <defaults>
</compile_context>

<pallas_src>
import functools

import jax
import jax.numpy as jnp
from jax import lax
from jax.experimental import pallas as pl
from jax.experimental.pallas import tpu as pltpu


def _con_loss_kernel(v_ref, l_ref, y_ref, out_ref, *, inv_temp, n_rows, n_cols,
                     tile_n):
    # sim = (V @ L.T) / temperature, contracted on D so the MXU is fed directly
    # (no XLU transpose of L).
    sim = lax.dot_general(
        v_ref[...], l_ref[...],
        dimension_numbers=(((1,), (1,)), ((), ())),
        preferred_element_type=jnp.float32,
    )
    if inv_temp != 1.0:                     # static Python branch
        sim = sim * jnp.float32(inv_temp)

    # Row-wise max subtraction (matches .max(dim=1, keepdim=True)).
    sim = sim - jnp.max(sim, axis=1, keepdims=True)
    exp_sim = jnp.exp(sim)                                        # f32, EUP

    pos_mask = (y_ref[...] == 1).astype(jnp.float32)              # Y == 1
    pos_sum = jnp.sum(exp_sim * pos_mask, axis=1, keepdims=True)  # [T, 1]
    row_sum = jnp.sum(exp_sim, axis=1, keepdims=True)             # [T, 1]
    neg_sum = row_sum - pos_sum                                   # [T, 1]

    # PyTorch denominator: (neg_sum[N,1] broadcast + exp_sim*pos_mask).sum(1)
    #                    = M * neg_sum + pos_sum
    denom = jnp.float32(n_cols) * neg_sum + pos_sum

    # -log(pos_sum / denom) == log(denom) - log(pos_sum)
    per_row = jnp.log(denom) - jnp.log(pos_sum)

    # Zero out rows that only exist because N was padded up to the tile size.
    row_ids = (pl.program_id(0) * tile_n
               + lax.broadcasted_iota(jnp.int32, (tile_n, 1), 0))
    out_ref[...] = jnp.where(row_ids < n_rows, per_row, 0.0)


def _choose_tile_n(n, m, d, in_itemsize):
    # Per-row VMEM footprint (bytes): double-buffered V/Y input rows plus the
    # f32 [T, M] temporaries (sim, exp_sim, masked product).
    per_row = 2 * (d + m) * in_itemsize + 3 * m * 4
    budget = 8 * 1024 * 1024       # well under default scoped VMEM on all gens
    tile = (budget // max(per_row, 1)) // 8 * 8
    tile = max(8, min(1024, tile))
    n_pad8 = -(-n // 8) * 8
    return min(tile, n_pad8)


def con_loss_pallas(V, L, Y, temperature=1.0):
    N, D = V.shape
    M, D2 = L.shape
    assert D == D2 and Y.shape == (N, M)

    in_itemsize = jnp.dtype(V.dtype).itemsize
    tile_n = _choose_tile_n(N, M, D, in_itemsize)
    num_tiles = pl.cdiv(N, tile_n)
    n_pad = num_tiles * tile_n
    if n_pad != N:
        V = jnp.pad(V, ((0, n_pad - N), (0, 0)))
        Y = jnp.pad(Y, ((0, n_pad - N), (0, 0)))

    kernel = functools.partial(
        _con_loss_kernel,
        inv_temp=1.0 / float(temperature),
        n_rows=N,
        n_cols=M,
        tile_n=tile_n,
    )

    cost = pl.CostEstimate(
        flops=2 * n_pad * M * D,
        transcendentals=n_pad * M + 2 * n_pad,        # exp + two logs per row
        bytes_accessed=(n_pad * D + M * D) * in_itemsize
        + n_pad * M * jnp.dtype(Y.dtype).itemsize
        + n_pad * 4,
    )

    per_row = pl.pallas_call(
        kernel,
        out_shape=jax.ShapeDtypeStruct((n_pad, 1), jnp.float32),
        grid=(num_tiles,),
        in_specs=[
            pl.BlockSpec((tile_n, D), lambda i: (i, 0)),   # V tile
            pl.BlockSpec((M, D), lambda i: (0, 0)),        # L resident
            pl.BlockSpec((tile_n, M), lambda i: (i, 0)),   # Y tile
        ],
        out_specs=pl.BlockSpec((tile_n, 1), lambda i: (i, 0)),
        compiler_params=pltpu.CompilerParams(
            dimension_semantics=("parallel",)),
        cost_estimate=cost,
    )(V, L, Y)

    # Tiny final reduction (mean over the N valid rows) done outside the kernel
    # so the grid axis stays "parallel" (no carried accumulator).
    return jnp.sum(per_row) / jnp.float32(N)


def con_loss_ref(V, L, Y, temperature=1.0):
    Vf, Lf, Yf = (x.astype(jnp.float32) for x in (V, L, Y))
    sim = (Vf @ Lf.T) / temperature
    sim = sim - jnp.max(sim, axis=1, keepdims=True)
    pos = (Yf == 1.0).astype(jnp.float32)
    neg = 1.0 - pos
    exp_sim = jnp.exp(sim)
    neg_sum = jnp.sum(exp_sim * neg, axis=1, keepdims=True)
    num = jnp.sum(exp_sim * pos, axis=1)
    den = jnp.sum(neg_sum + exp_sim * pos, axis=1)
    return -jnp.mean(jnp.log(num / den))


if __name__ == "__main__":
    key = jax.random.PRNGKey(0)
    kv, kl, ky = jax.random.split(key, 3)

    N, M, D = 8, 16, 32
    V = jax.random.normal(kv, (N, D), dtype=jnp.float32)
    L = jax.random.normal(kl, (M, D), dtype=jnp.float32)

    # Binary positive/negative label matrix; guarantee >=1 positive per row
    # (rows with zero positives give log(0), faithfully matching PyTorch).
    Y = (jax.random.uniform(ky, (N, M)) < 0.25).astype(jnp.float32)
    Y = Y.at[jnp.arange(N), jnp.arange(N) % M].set(1.0)

    # f32 path, temperature == 1 (multiply skipped).
    loss1 = con_loss_pallas(V, L, Y, temperature=1.0)
    jax.block_until_ready(loss1)
    ref1 = con_loss_ref(V, L, Y, temperature=1.0)
    assert jnp.allclose(loss1, ref1, rtol=1e-5, atol=1e-5), (loss1, ref1)

    # f32 path, non-unit temperature (exercises the folded 1/temperature).
    loss2 = con_loss_pallas(V, L, Y, temperature=0.5)
    jax.block_until_ready(loss2)
    ref2 = con_loss_ref(V, L, Y, temperature=0.5)
    assert jnp.allclose(loss2, ref2, rtol=1e-5, atol=1e-5), (loss2, ref2)

    # bf16 inputs (half the DMA bytes), f32 math inside the kernel.
    loss3 = con_loss_pallas(V.astype(jnp.bfloat16), L.astype(jnp.bfloat16),
                            Y.astype(jnp.bfloat16), temperature=1.0)
    jax.block_until_ready(loss3)
    assert jnp.isfinite(loss3)
    assert jnp.abs(loss3 - ref1) < 0.2, (loss3, ref1)

    print("KERNEL_OK")
</pallas_src>

<mosaic_0001>
module attributes {stable_mosaic.version = 11 : i64} {
  func.func @_con_loss_kernel(%arg0: i32, %arg1: memref<8x32xf32, #tpu.memory_space<vmem>>, %arg2: memref<16x32xf32, #tpu.memory_space<vmem>>, %arg3: memref<8x16xf32, #tpu.memory_space<vmem>>, %arg4: memref<8x1xf32, #tpu.memory_space<vmem>>) attributes {dimension_semantics = [#tpu.dimension_semantics<parallel>], iteration_bounds = array<i64: 1>, scalar_prefetch = 0 : i64, scratch_operands = 0 : i64, tpu.core_type = #tpu.core_type<tc>, window_params = [{transform_indices = @transform_0, window_bounds = array<i64: 8, 32>}, {pipeline_mode = #tpu.pipeline_mode<synchronous>, transform_indices = @transform_1, window_bounds = array<i64: 16, 32>}, {transform_indices = @transform_2, window_bounds = array<i64: 8, 16>}, {transform_indices = @transform_3, window_bounds = array<i64: 8, 1>}]} {
    %c0 = arith.constant 0 : index
    %c0_0 = arith.constant 0 : index
    %0 = vector.load %arg1[%c0, %c0_0] : memref<8x32xf32, #tpu.memory_space<vmem>>, vector<8x32xf32>
    %c0_1 = arith.constant 0 : index
    %c0_2 = arith.constant 0 : index
    %1 = vector.load %arg2[%c0_1, %c0_2] : memref<16x32xf32, #tpu.memory_space<vmem>>, vector<16x32xf32>
    %cst = arith.constant dense<0.000000e+00> : vector<8x16xf32>
    %2 = tpu.matmul %0, %1, %cst {dimension_numbers = #tpu.dot_dimension_numbers<[1], [1], [0], [0], [0, 0, 1, 0], [], []>} : vector<8x32xf32>, vector<16x32xf32>, vector<8x16xf32> -> vector<8x16xf32>
    %cst_3 = arith.constant dense<0xFF800000> : vector<8xf32>
    %3 = vector.multi_reduction <maximumf>, %2, %cst_3 [1] : vector<8x16xf32> to vector<8xf32>
    %4 = vector.shape_cast %3 : vector<8xf32> to vector<8x1xf32>
    %5 = vector.broadcast %4 : vector<8x1xf32> to vector<8x16xf32>
    %6 = arith.subf %2, %5 : vector<8x16xf32>
    %7 = math.exp %6 : vector<8x16xf32>
    %c0_4 = arith.constant 0 : index
    %c0_5 = arith.constant 0 : index
    %8 = vector.load %arg3[%c0_4, %c0_5] : memref<8x16xf32, #tpu.memory_space<vmem>>, vector<8x16xf32>
    %cst_6 = arith.constant 1.000000e+00 : f32
    %9 = vector.broadcast %cst_6 : f32 to vector<8x16xf32>
    %10 = arith.cmpf oeq, %8, %9 : vector<8x16xf32>
    %11 = arith.extui %10 : vector<8x16xi1> to vector<8x16xi32>
    %12 = arith.sitofp %11 : vector<8x16xi32> to vector<8x16xf32>
    %13 = arith.mulf %7, %12 : vector<8x16xf32>
    %cst_7 = arith.constant dense<0.000000e+00> : vector<8xf32>
    %14 = vector.multi_reduction <add>, %13, %cst_7 [1] : vector<8x16xf32> to vector<8xf32>
    %15 = vector.shape_cast %14 : vector<8xf32> to vector<8x1xf32>
    %cst_8 = arith.constant dense<0.000000e+00> : vector<8xf32>
    %16 = vector.multi_reduction <add>, %7, %cst_8 [1] : vector<8x16xf32> to vector<8xf32>
    %17 = vector.shape_cast %16 : vector<8xf32> to vector<8x1xf32>
    %18 = arith.subf %17, %15 : vector<8x1xf32>
    %cst_9 = arith.constant 1.600000e+01 : f32
    %19 = vector.broadcast %cst_9 : f32 to vector<8x1xf32>
    %20 = arith.mulf %19, %18 : vector<8x1xf32>
    %21 = arith.addf %20, %15 : vector<8x1xf32>
    %22 = math.log %21 : vector<8x1xf32>
    %23 = math.log %15 : vector<8x1xf32>
    %24 = arith.subf %22, %23 : vector<8x1xf32>
    %c8_i32 = arith.constant 8 : i32
    %25 = arith.muli %arg0, %c8_i32 : i32
    %26 = tpu.iota {dimensions = array<i32: 0>} : vector<8x1xi32>
    %27 = vector.broadcast %25 : i32 to vector<8x1xi32>
    %28 = arith.addi %27, %26 : vector<8x1xi32>
    %c8_i32_10 = arith.constant 8 : i32
    %29 = vector.broadcast %c8_i32_10 : i32 to vector<8x1xi32>
    %30 = arith.cmpi slt, %28, %29 : vector<8x1xi32>
    %cst_11 = arith.constant 0.000000e+00 : f32
    %31 = vector.broadcast %cst_11 : f32 to vector<8x1xf32>
    %32 = arith.select %30, %24, %31 : vector<8x1xi1>, vector<8x1xf32>
    %c0_12 = arith.constant 0 : index
    %c0_13 = arith.constant 0 : index
    %33 = vector.load %arg4[%c0_12, %c0_13] : memref<8x1xf32, #tpu.memory_space<vmem>>, vector<8x1xf32>
    tpu.vector_store %arg4[%c0_12, %c0_13], %32 {strides = array<i32>} : memref<8x1xf32, #tpu.memory_space<vmem>>, vector<8x1xf32>,
    return
  }
  func.func @transform_0(%arg0: i32) -> (i32, i32) {
    %c0_i32 = arith.constant 0 : i32
    %c0_i32_0 = arith.constant 0 : i32
    return %arg0, %c0_i32 : i32, i32
  }
  func.func @transform_1(%arg0: i32) -> (i32, i32) {
    %c0_i32 = arith.constant 0 : i32
    %c0_i32_0 = arith.constant 0 : i32
    %c0_i32_1 = arith.constant 0 : i32
    return %c0_i32, %c0_i32_0 : i32, i32
  }
  func.func @transform_2(%arg0: i32) -> (i32, i32) {
    %c0_i32 = arith.constant 0 : i32
    %c0_i32_0 = arith.constant 0 : i32
    return %arg0, %c0_i32 : i32, i32
  }
  func.func @transform_3(%arg0: i32) -> (i32, i32) {
    %c0_i32 = arith.constant 0 : i32
    %c0_i32_0 = arith.constant 0 : i32
    return %arg0, %c0_i32 : i32, i32
  }
}

</mosaic_0001>

<bundles_post_ra>
// kernel: tpu_custom_call.1
= control target key start
LH: loop header
LB: loop body
LE: loop exit
PB: predicated region body
PF: predicated region fallthrough
CT: control target
= control target key end

     0   :  { %8 = vsyncpa [#allocation3], 0  ;;  %s347_s0 = inlined_call_operand.hbm [shape: f32[8,32], index: 0, kind: input, shape index: {}]   ;;  %s348_s1 = inlined_call_operand.hbm [shape: f32[16,32], index: 1, kind: input, shape index: {}]   ;;  %s349_s2 = inlined_call_operand.hbm [shape: f32[8,16], index: 2, kind: input, shape index: {}]   ;;  %s350_s3 = inlined_call_operand.vmem [shape: f32[8,1], index: 3, kind: output, shape index: {}]  }
   0x1   :  { %9 = vsyncpa [#allocation5], 0  ;;  %s277_s12 = smov [#allocation4]   ;;  %s207_s16 = scalar_lea.hbm %s348_s1, 256 }
   0x2   :  { %s25_s13 = sshll.u32 %s277_s12, 4  ;;  %p208_p0 = scmp.ne.s32.totalorder %s348_s1, %s207_s16  ;;  %s26_s13 = int_to_ptr.vmem [resolvable:$true] %s25_s13 }
   0x3   :  { %p211_p1 = scmp.lt.u32.totalorder %s207_s16, %s348_s1 }
   0x5   :  { %p213_p2 = pnand %p211_p1, %p208_p0 }
   0x7   :  { %216 = shalt.err (!%p213_p2)
}
   0x8   :  { %s217_s21 = scalar_lea.vmem %s26_s13, 256  ;;  %p222_p4 = scmp.lt.s32.totalorder %s26_s13, %s26_s13 }
   0x9   :  { %p218_p3 = scmp.ne.s32.totalorder %s26_s13, %s217_s21  ;;  %p223_p5 = scmp.lt.s32.totalorder %s217_s21, %s217_s21 }
   0xb   :  { %p224_p6 = por %p223_p5, %p222_p4 }
   0xd   :  { %p225_p7 = pnand %p224_p6, %p218_p3 }
   0xf   :  { %228 = shalt.err (!%p225_p7)
}
  0x10   :  { %s278_s22 = smov 128   ;;  %s279_s23 = smov 8  }
  0x11   :  { %31 = dma.hbm_to_vmem [thread:$0]  %s348_s1, 256, %s26_s13, [#allocation5], %s278_s22, %s278_s22, %s279_s23  }
  0x12   :  { %s280_s26 = smov [#allocation2]   ;;  %s281_s28 = smov [#allocation6]  }
  0x13   :  { %s16_s27 = sshll.u32 %s280_s26, 4  ;;  %s38_s29 = sshll.u32 %s281_s28, 4  ;;  %s17_s27 = int_to_ptr.vmem [resolvable:$true] %s16_s27  ;;  %s39_s29 = int_to_ptr.vmem [resolvable:$true] %s38_s29 }
  0x14   :  { %s229_s5 = scalar_lea.hbm %s347_s0, 128 }
  0x15   :  { %p230_p8 = scmp.ne.s32.totalorder %s347_s0, %s229_s5  ;;  %p233_p9 = scmp.lt.u32.totalorder %s229_s5, %s347_s0 }
  0x17   :  { %p235_p10 = pnand %p233_p9, %p230_p8 }
  0x19   :  { %238 = shalt.err (!%p235_p10)
}
  0x1a   :  { %s239_s1 = scalar_lea.vmem %s17_s27, 128  ;;  %p244_p12 = scmp.lt.s32.totalorder %s17_s27, %s17_s27 }
  0x1b   :  { %p240_p11 = scmp.ne.s32.totalorder %s17_s27, %s239_s1  ;;  %p245_p13 = scmp.lt.s32.totalorder %s239_s1, %s239_s1 }
  0x1d   :  { %p246_p0 = por %p245_p13, %p244_p12 }
  0x1f   :  { %p247_p1 = pnand %p246_p0, %p240_p11 }
  0x21   :  { %250 = shalt.err (!%p247_p1)
}
  0x22   :  { %19 = dma.hbm_to_vmem [thread:$0]  %s347_s0, 128, %s17_s27, [#allocation3]  }
  0x23   :  { %s251_s14 = scalar_lea.hbm %s349_s2, 128 }
  0x24   :  { %p252_p2 = scmp.ne.s32.totalorder %s349_s2, %s251_s14  ;;  %p255_p3 = scmp.lt.u32.totalorder %s251_s14, %s349_s2 }
  0x26   :  { %p257_p4 = pnand %p255_p3, %p252_p2 }
  0x28   :  { %260 = shalt.err (!%p257_p4)
}
  0x29   :  { %s261_s19 = scalar_lea.vmem %s39_s29, 128  ;;  %p266_p6 = scmp.lt.s32.totalorder %s39_s29, %s39_s29 }
  0x2a   :  { %p262_p5 = scmp.ne.s32.totalorder %s39_s29, %s261_s19  ;;  %p267_p7 = scmp.lt.s32.totalorder %s261_s19, %s261_s19 }
  0x2c   :  { %p268_p8 = por %p267_p7, %p266_p6 }
  0x2e   :  { %p269_p9 = pnand %p268_p8, %p262_p5 }
  0x30   :  { %272 = shalt.err (!%p269_p9)
}
  0x31   :  { %41 = dma.hbm_to_vmem [thread:$0]  %s349_s2, 128, %s39_s29, [#allocation5]  }
  0x32   :  { %273 = dma.done.wait [#allocation3], 128  }
  0x33   :  { %274 = vsyncadd [#allocation3], 4294967168 }
  0x34   :  { %275 = dma.done.wait [#allocation5], 384  }
  0x35   :  { %276 = vsyncadd [#allocation5], 4294966912  ;;  %v282_v0 = vmov 0.0|0.0   ;;  %vm283_vm0 = vmmov 0   ;;  %v284_v1 = vmov 0.0   ;;  %vm54_vm1 = vcmask 261120  }
  0x36   :  { %189 = vmatprep.subr.bf16.mxu0 %v282_v0  ;;  %186 = vmatprep.mubr.msk.f32.mxu0 %vm283_vm0, %v284_v1  ;;  %v52_v2 = vld [vmem:[#allocation4] sm:$0xff]  ;;  %v53_v3 = vld [vmem:[#allocation4 + $0x8] sm:$0xff]  ;;  %vm191_vm2 = vmpackc.low %vm54_vm1, %vm54_vm1  ;;  %vm134_vm3 = vcmask 130048   ;;  %vm167_vm5 = vcmask 7168  }
  0x37   :  { %v190_v4 = vpack.c.bf16 %v53_v3, %v52_v2  ;;  %v51_v5 = vld [vmem:[#allocation2] sm:$0xff]  ;;  %v141_v12 = vld [vmem:[#allocation6] sm:$0xff] }
  0x38   :  { %vm142_vm4 = vcmp.eq.f32.partialorder %v141_v12, 1.0 }
  0x39   :  { %192 = vmatpush3.bf16.xpose.msk.msra.mxu0 %vm191_vm2, %v190_v4  ;;  %v178_v13 = vsel %vm142_vm4, 1.0, %v284_v1 }
  0x40   :  { %187 = vmatmul.mubr.msk.f32.vlgmr.msra.gmra.mrb[0].mxu0 %vm54_vm1, %v51_v5 }
 0x113   :  { %v130_v6 = vpop.f32.mrb[0].mxu0 }
 0x114   :  { %v188_v7 = vpop.f32.mrb[1].mxu0  ;;  %v135_v8 = vsel %vm134_vm3, %v130_v6, -inf }
 0x115   :  { %136 = vmax.xlane.f32.xlu0 %v135_v8 }
 0x1a2   :  { %v137_v9 = vpop.xlane.xlu0 %136 }
 0x1a3   :  { %v138_v10 = vsub.f32 %v130_v6, %v137_v9 }
 0x1a5   :  { %v139_v11 = vmul.f32 1.442695, %v138_v10 }
 0x1a7   :  { %201 = vpow2.f32 %v139_v11 }
 0x1b1   :  { %v202_v14 = vpop.eup %201 }
 0x1b2   :  { %v149_v15 = vsel %vm134_vm3, %v202_v14, 0.0  ;;  %v145_v16 = vmul.f32 %v202_v14, %v178_v13 }
 0x1b3   :  { %150 = vadd.xlane.f32.xlu1 %v149_v15 }
 0x1b4   :  { %v146_v17 = vsel %vm134_vm3, %v145_v16, 0.0 }
 0x1b5   :  { %147 = vadd.xlane.f32.xlu0 %v146_v17 }
 0x240   :  { %v151_v18 = vpop.xlane.xlu1 %150 }
 0x242   :  { %v148_v19 = vpop.xlane.xlu0 %147 }
 0x243   :  { %v152_v20 = vsub.f32 %v151_v18, %v148_v19  ;;  %203 = vlog2.f32 %v148_v19 }
 0x245   :  { %v153_v21 = vmul.f32 16.0, %v152_v20 }
 0x247   :  { %v154_v22 = vadd.f32 %v153_v21, %v148_v19 }
 0x249   :  { %205 = vlog2.f32 %v154_v22 }
 0x24d   :  { %v204_v23 = vpop.eup %203 }
 0x24e   :  { %v158_v26 = vmul.f32 0.6931472, %v204_v23 }
 0x253   :  { %v206_v24 = vpop.eup %205 }
 0x254   :  { %v156_v25 = vmul.f32 0.6931472, %v206_v24 }
 0x256   :  { %v159_v27 = vsub.f32 %v156_v25, %v158_v26 }
 0x258   :  { %168 = vst.msk [vmem:[%s350_s3] sm:$0xff] %vm167_vm5, %v159_v27 }
 0x259   :  { %173 = vsyncpa [#allocation3], 1 }
 0x25a   :  { %174 = vsyncpa [#allocation5], 1 }

</bundles_post_ra>
